<compile_context>
chip_gen: v5e
topology: v5e:2x2
jax: 0.10.0
libtpu: 0.0.40
codegen_flags: <defaults>
</compile_context>

<pallas_src>
import functools

import jax
import jax.numpy as jnp
from jax import lax
from jax.experimental import pallas as pl
from jax.experimental.pallas import tpu as pltpu


def _self_attention_kernel(x_ref, wqkv_ref, bqkv_ref, o_ref, *,
                           head_dim, mxu_dtype, exp_dtype, approx_recip):
    # x_ref: (Bt, S, D); wqkv: (D, 3H); bqkv: (1, 3H) f32; out: (Bt, S, H)
    H = head_dim
    Bt, S, D = x_ref.shape

    x = x_ref[...]
    if mxu_dtype is not None and x.dtype != mxu_dtype:
        x = x.astype(mxu_dtype)  # normally a no-op: x is pre-cast in the wrapper

    # Fused QKV projection on the flattened (Bt*S, D) slab: one MXU matmul with
    # M = Bt*S, f32 accumulation, f32 bias add.
    x2 = x.reshape(Bt * S, D)
    qkv = jnp.dot(x2, wqkv_ref[...], preferred_element_type=jnp.float32)
    qkv = (qkv + bqkv_ref[...]).reshape(Bt, S, 3 * H)          # (Bt, S, 3H) f32

    # Static slices; q already carries 1/sqrt(norm_scale) (folded into Wq/bq).
    q = qkv[:, :, 0 * H:1 * H]
    k = qkv[:, :, 1 * H:2 * H]
    v = qkv[:, :, 2 * H:3 * H]

    if mxu_dtype is not None:
        q, k, v = q.astype(mxu_dtype), k.astype(mxu_dtype), v.astype(mxu_dtype)

    # scores = q @ k^T, batched over Bt; contract the head dim (no transpose).
    s = lax.dot_general(q, k, (((2,), (2,)), ((0,), (0,))),
                        preferred_element_type=jnp.float32)     # (Bt, S, S)

    # Numerically-stable softmax; the 1/rowsum is applied after p@v.
    s = s - jnp.max(s, axis=-1, keepdims=True)
    p = jnp.exp(s.astype(exp_dtype))                            # exp_dtype (f32 default)
    row_sum = jnp.sum(p.astype(jnp.float32), axis=-1, keepdims=True)  # (Bt, S, 1)
    if approx_recip:
        inv = pl.reciprocal(row_sum, approx=True)               # EUP slot, ~1e-3 rel err
    else:
        inv = 1.0 / row_sum                                     # exact

    if mxu_dtype is not None and p.dtype != mxu_dtype:
        p = p.astype(mxu_dtype)
    out = lax.dot_general(p, v, (((2,), (1,)), ((0,), (0,))),
                          preferred_element_type=jnp.float32)   # (Bt, S, H)
    o_ref[...] = (out * inv).astype(o_ref.dtype)


def _pick_block_b(B, S, D, H, x_itemsize):
    """Largest Bt dividing B whose per-step live block bytes fit a safe budget."""
    per_b = (2 * S * D * x_itemsize      # x block, double-buffered
             + 2 * S * H * 4             # out block, double-buffered (f32 upper bound)
             + S * 3 * H * 4             # fused qkv (f32)
             + 3 * S * S * 4)            # scores + exp + prob temporaries (f32)
    budget = 8 << 20                     # ~8 MiB of per-step block state (v7x-safe)
    bt = max(1, min(B, budget // max(per_b, 1)))
    while B % bt:                        # keep the grid exact (no ragged last block)
        bt -= 1
    return bt


def self_attention(x, wq, wk, wv, bq, bk, bv, norm_scale, *,
                   mxu_dtype=jnp.bfloat16, block_b=None,
                   softmax_exp_dtype=jnp.float32, approx_recip=False):
    """x: (B, S, D); w*: (D, H); b*: (1, H) -> (B, S, H).

    mxu_dtype: None => exact f32 MXU path; jnp.bfloat16 => fast MXU path
      (bf16 operands, f32 accumulation, f32 softmax).  Recommended on all
      generations for production (f32 matmul is multi-pass emulation on v5e).
    softmax_exp_dtype: jnp.float32 (safe everywhere) or jnp.bfloat16 on
      v6e/v7x (bf16 EUP halves exp pressure at large S).  Keep f32 on v5e.
    approx_recip: use the EUP vrcp for the softmax denominator (rows then sum
      to ~1 +- 1e-3); default False for parity with the PyTorch softmax.
    """
    B, S, D = x.shape
    H = wq.shape[1]
    out_dtype = x.dtype

    # Prep-time fusion: fold the score scale into the Q projection; concatenate
    # the three projections into one (D, 3H) weight and (1, 3H) bias.
    scale = 1.0 / (float(norm_scale) ** 0.5)
    wqkv = jnp.concatenate([wq * scale, wk, wv], axis=1)                      # (D, 3H)
    bqkv = jnp.concatenate([bq * scale, bk, bv], axis=1).astype(jnp.float32)  # (1, 3H)

    if mxu_dtype is not None:
        wqkv = wqkv.astype(mxu_dtype)
        x = x.astype(mxu_dtype)          # halve the dominant HBM->VMEM stream

    if block_b is None:
        block_b = _pick_block_b(B, S, D, H, x.dtype.itemsize)
    assert B % block_b == 0, "block_b must divide B"

    # Explicit VMEM budget (default scoped limit is well below physical; v7x
    # has only 64 MiB physical, so clamp there).
    est = (2 * block_b * S * D * x.dtype.itemsize
           + 2 * block_b * S * H * jnp.dtype(out_dtype).itemsize
           + D * 3 * H * wqkv.dtype.itemsize + 3 * H * 4
           + block_b * S * 3 * H * 4
           + 3 * block_b * S * S * 4)
    vmem_limit = int(min(max(2 * est, 16 << 20), 64 << 20))

    kernel = functools.partial(_self_attention_kernel,
                               head_dim=H, mxu_dtype=mxu_dtype,
                               exp_dtype=softmax_exp_dtype,
                               approx_recip=approx_recip)

    return pl.pallas_call(
        kernel,
        out_shape=jax.ShapeDtypeStruct((B, S, H), out_dtype),
        grid_spec=pltpu.PrefetchScalarGridSpec(
            num_scalar_prefetch=0,
            grid=(B // block_b,),
            in_specs=[
                pl.BlockSpec((block_b, S, D), lambda b: (b, 0, 0)),   # x
                pl.BlockSpec((D, 3 * H), lambda b: (0, 0)),           # fused Wqkv
                pl.BlockSpec((1, 3 * H), lambda b: (0, 0)),           # fused bqkv
            ],
            out_specs=pl.BlockSpec((block_b, S, H), lambda b: (b, 0, 0)),
        ),
        compiler_params=pltpu.CompilerParams(
            dimension_semantics=("parallel",),       # v7x: shard batch blocks on 2 TCs
            vmem_limit_bytes=vmem_limit),
    )(x, wqkv, bqkv)


def self_attention_ref(x, wq, wk, wv, bq, bk, bv, norm_scale):
    hp = lax.Precision.HIGHEST
    q = jnp.einsum("bsd,dh->bsh", x, wq, precision=hp) + bq
    k = jnp.einsum("bsd,dh->bsh", x, wk, precision=hp) + bk
    v = jnp.einsum("bsd,dh->bsh", x, wv, precision=hp) + bv
    s = jnp.einsum("bsh,bth->bst", q, k, precision=hp) / (norm_scale ** 0.5)
    p = jax.nn.softmax(s, axis=-1)
    return jnp.einsum("bst,bth->bsh", p, v, precision=hp)


if __name__ == "__main__":
    # Small shapes consistent with the module: SelfAttention(out_dim=96, d=12)
    B, S = 2, 8
    out_dim, d = 96, 12
    head_dim = out_dim // d          # 8
    norm_scale = out_dim // d        # self.norm_scale

    key = jax.random.PRNGKey(0)
    kx, kq, kk, kv, kbq, kbk, kbv, kx2 = jax.random.split(key, 8)

    x = jax.random.normal(kx, (B, S, out_dim), dtype=jnp.float32)

    # nn.Linear-style uniform init (bound = 1/sqrt(in_features)).
    bound = 1.0 / (out_dim ** 0.5)
    wq = jax.random.uniform(kq, (out_dim, head_dim), jnp.float32, -bound, bound)
    wk = jax.random.uniform(kk, (out_dim, head_dim), jnp.float32, -bound, bound)
    wv = jax.random.uniform(kv, (out_dim, head_dim), jnp.float32, -bound, bound)
    bq = jax.random.uniform(kbq, (1, head_dim), jnp.float32, -bound, bound)
    bk = jax.random.uniform(kbk, (1, head_dim), jnp.float32, -bound, bound)
    bv = jax.random.uniform(kbv, (1, head_dim), jnp.float32, -bound, bound)

    ref = self_attention_ref(x, wq, wk, wv, bq, bk, bv, norm_scale)

    # f32 MXU path, exact softmax reciprocal.
    out_f32 = self_attention(x, wq, wk, wv, bq, bk, bv, norm_scale, mxu_dtype=None)
    out_f32 = jax.block_until_ready(out_f32)
    assert out_f32.shape == (B, S, head_dim)
    err = float(jnp.max(jnp.abs(out_f32 - ref)))
    assert jnp.allclose(out_f32, ref, atol=5e-3, rtol=5e-3), f"f32 path max err {err}"

    # bf16 MXU fast path (bf16 operands, f32 accumulation, f32 softmax).
    out_bf16 = self_attention(x, wq, wk, wv, bq, bk, bv, norm_scale,
                              mxu_dtype=jnp.bfloat16)
    out_bf16 = jax.block_until_ready(out_bf16)
    assert out_bf16.shape == (B, S, head_dim)
    err = float(jnp.max(jnp.abs(out_bf16 - ref)))
    assert jnp.allclose(out_bf16, ref, atol=2.5e-2, rtol=2.5e-2), f"bf16 path max err {err}"

    # Exercise the batch-blocked grid (>1 step): B=4 with 2 batch elements/step.
    B2 = 4
    x2 = jax.random.normal(kx2, (B2, S, out_dim), dtype=jnp.float32)
    ref2 = self_attention_ref(x2, wq, wk, wv, bq, bk, bv, norm_scale)
    out2 = self_attention(x2, wq, wk, wv, bq, bk, bv, norm_scale,
                          mxu_dtype=None, block_b=2)
    out2 = jax.block_until_ready(out2)
    assert out2.shape == (B2, S, head_dim)
    err = float(jnp.max(jnp.abs(out2 - ref2)))
    assert jnp.allclose(out2, ref2, atol=5e-3, rtol=5e-3), f"blocked grid max err {err}"

    print("KERNEL_OK")
</pallas_src>

<mosaic_0001>
module attributes {stable_mosaic.version = 11 : i64} {
  func.func @_self_attention_kernel(%arg0: i32, %arg1: memref<2x8x96xf32, #tpu.memory_space<vmem>>, %arg2: memref<96x24xf32, #tpu.memory_space<vmem>>, %arg3: memref<1x24xf32, #tpu.memory_space<vmem>>, %arg4: memref<2x8x8xf32, #tpu.memory_space<vmem>>) attributes {dimension_semantics = [#tpu.dimension_semantics<parallel>], iteration_bounds = array<i64: 1>, scalar_prefetch = 0 : i64, scratch_operands = 0 : i64, tpu.core_type = #tpu.core_type<tc>, window_params = [{transform_indices = @transform_0, window_bounds = array<i64: 2, 8, 96>}, {pipeline_mode = #tpu.pipeline_mode<synchronous>, transform_indices = @transform_1, window_bounds = array<i64: 96, 24>}, {pipeline_mode = #tpu.pipeline_mode<synchronous>, transform_indices = @transform_2, window_bounds = array<i64: 1, 24>}, {transform_indices = @transform_3, window_bounds = array<i64: 2, 8, 8>}]} {
    %c0 = arith.constant 0 : index
    %c0_0 = arith.constant 0 : index
    %c0_1 = arith.constant 0 : index
    %0 = vector.load %arg1[%c0, %c0_0, %c0_1] : memref<2x8x96xf32, #tpu.memory_space<vmem>>, vector<2x8x96xf32>
    %1 = vector.shape_cast %0 : vector<2x8x96xf32> to vector<16x96xf32>
    %c0_2 = arith.constant 0 : index
    %c0_3 = arith.constant 0 : index
    %2 = vector.load %arg2[%c0_2, %c0_3] : memref<96x24xf32, #tpu.memory_space<vmem>>, vector<96x24xf32>
    %cst = arith.constant dense<0.000000e+00> : vector<16x24xf32>
    %3 = tpu.matmul %1, %2, %cst {dimension_numbers = #tpu.dot_dimension_numbers<[1], [0], [0], [1], [0, 0, 1, 1], [], []>} : vector<16x96xf32>, vector<96x24xf32>, vector<16x24xf32> -> vector<16x24xf32>
    %c0_4 = arith.constant 0 : index
    %c0_5 = arith.constant 0 : index
    %4 = vector.load %arg3[%c0_4, %c0_5] : memref<1x24xf32, #tpu.memory_space<vmem>>, vector<1x24xf32>
    %5 = vector.broadcast %4 : vector<1x24xf32> to vector<16x24xf32>
    %6 = arith.addf %3, %5 : vector<16x24xf32>
    %7 = vector.shape_cast %6 : vector<16x24xf32> to vector<2x8x24xf32>
    %8 = vector.extract_strided_slice %7 {offsets = [0, 0, 0], sizes = [2, 8, 8], strides = [1, 1, 1]} : vector<2x8x24xf32> to vector<2x8x8xf32>
    %9 = vector.extract_strided_slice %7 {offsets = [0, 0, 8], sizes = [2, 8, 8], strides = [1, 1, 1]} : vector<2x8x24xf32> to vector<2x8x8xf32>
    %10 = vector.extract_strided_slice %7 {offsets = [0, 0, 16], sizes = [2, 8, 8], strides = [1, 1, 1]} : vector<2x8x24xf32> to vector<2x8x8xf32>
    %cst_6 = arith.constant dense<0.000000e+00> : vector<2x8x8xf32>
    %11 = tpu.matmul %8, %9, %cst_6 {dimension_numbers = #tpu.dot_dimension_numbers<[2], [2], [1], [1], [0, 0, 0, 1, 1, 1], [0], [0]>} : vector<2x8x8xf32>, vector<2x8x8xf32>, vector<2x8x8xf32> -> vector<2x8x8xf32>
    %cst_7 = arith.constant dense<0xFF800000> : vector<2x8xf32>
    %12 = vector.multi_reduction <maximumf>, %11, %cst_7 [2] : vector<2x8x8xf32> to vector<2x8xf32>
    %13 = vector.shape_cast %12 : vector<2x8xf32> to vector<2x8x1xf32>
    %14 = vector.broadcast %13 : vector<2x8x1xf32> to vector<2x8x8xf32>
    %15 = arith.subf %11, %14 : vector<2x8x8xf32>
    %16 = math.exp %15 : vector<2x8x8xf32>
    %cst_8 = arith.constant dense<0.000000e+00> : vector<2x8xf32>
    %17 = vector.multi_reduction <add>, %16, %cst_8 [2] : vector<2x8x8xf32> to vector<2x8xf32>
    %18 = vector.shape_cast %17 : vector<2x8xf32> to vector<2x8x1xf32>
    %cst_9 = arith.constant 1.000000e+00 : f32
    %19 = vector.broadcast %cst_9 : f32 to vector<2x8x1xf32>
    %20 = arith.divf %19, %18 : vector<2x8x1xf32>
    %cst_10 = arith.constant dense<0.000000e+00> : vector<2x8x8xf32>
    %21 = tpu.matmul %16, %10, %cst_10 {dimension_numbers = #tpu.dot_dimension_numbers<[2], [1], [1], [2], [0, 0, 0, 1, 1, 2], [0], [0]>} : vector<2x8x8xf32>, vector<2x8x8xf32>, vector<2x8x8xf32> -> vector<2x8x8xf32>
    %22 = vector.broadcast %20 : vector<2x8x1xf32> to vector<2x8x8xf32>
    %23 = arith.mulf %21, %22 : vector<2x8x8xf32>
    %c0_11 = arith.constant 0 : index
    %c0_12 = arith.constant 0 : index
    %c0_13 = arith.constant 0 : index
    %24 = vector.load %arg4[%c0_11, %c0_12, %c0_13] : memref<2x8x8xf32, #tpu.memory_space<vmem>>, vector<2x8x8xf32>
    tpu.vector_store %arg4[%c0_11, %c0_12, %c0_13], %23 {strides = array<i32>} : memref<2x8x8xf32, #tpu.memory_space<vmem>>, vector<2x8x8xf32>,
    return
  }
  func.func @transform_0(%arg0: i32) -> (i32, i32, i32) {
    %c0_i32 = arith.constant 0 : i32
    %c0_i32_0 = arith.constant 0 : i32
    %c0_i32_1 = arith.constant 0 : i32
    return %arg0, %c0_i32, %c0_i32_0 : i32, i32, i32
  }
  func.func @transform_1(%arg0: i32) -> (i32, i32) {
    %c0_i32 = arith.constant 0 : i32
    %c0_i32_0 = arith.constant 0 : i32
    %c0_i32_1 = arith.constant 0 : i32
    return %c0_i32, %c0_i32_0 : i32, i32
  }
  func.func @transform_2(%arg0: i32) -> (i32, i32) {
    %c0_i32 = arith.constant 0 : i32
    %c0_i32_0 = arith.constant 0 : i32
    %c0_i32_1 = arith.constant 0 : i32
    return %c0_i32, %c0_i32_0 : i32, i32
  }
  func.func @transform_3(%arg0: i32) -> (i32, i32, i32) {
    %c0_i32 = arith.constant 0 : i32
    %c0_i32_0 = arith.constant 0 : i32
    %c0_i32_1 = arith.constant 0 : i32
    return %arg0, %c0_i32, %c0_i32_0 : i32, i32, i32
  }
}

</mosaic_0001>

<bundles_post_ra>
// kernel: tpu_custom_call.1
= control target key start
LH: loop header
LB: loop body
LE: loop exit
PB: predicated region body
PF: predicated region fallthrough
CT: control target
= control target key end

     0   :  { %s373_s0 = inlined_call_operand.vmem [shape: f32[2,8,96], index: 0, kind: input, shape index: {}]   ;;  %s374_s1 = inlined_call_operand.vmem [shape: f32[96,24], index: 1, kind: input, shape index: {}]   ;;  %s375_s2 = inlined_call_operand.vmem [shape: f32[1,24], index: 2, kind: input, shape index: {}]   ;;  %s376_s3 = inlined_call_operand.hbm [shape: f32[2,8,8], index: 3, kind: output, shape index: {}]  }
   0x1   :  { %v28_v0 = vld [vmem:[%s374_s1 + $0x58] sm:$0xff]  ;;  %v27_v1 = vld [vmem:[%s374_s1 + $0x50] sm:$0xff]  ;;  %v26_v2 = vld [vmem:[%s374_s1 + $0x48] sm:$0xff] }
   0x2   :  { %44 = vmatpush.msra.mxu0 %v28_v0  ;;  %v25_v3 = vld [vmem:[%s374_s1 + $0x40] sm:$0xff] }
   0x4   :  { %45 = vmatpush.msra.mxu0 %v27_v1 }
   0x6   :  { %46 = vmatpush.msra.mxu0 %v26_v2 }
   0x7   :  { %8 = vsyncpa [#allocation3], 0  ;;  %v24_v4 = vld [vmem:[%s374_s1 + $0x38] sm:$0xff]  ;;  %v23_v5 = vld [vmem:[%s374_s1 + $0x30] sm:$0xff]  ;;  %vm33_vm0 = vcmask 785408   ;;  %s289_s15 = smov 120  }
   0x8   :  { %47 = vmatpush.msra.mxu0 %v25_v3  ;;  %v22_v6 = vld [vmem:[%s374_s1 + $0x28] sm:$0xff]  ;;  %v21_v7 = vld [vmem:[%s374_s1 + $0x20] sm:$0xff]  ;;  %v20_v8 = vld [vmem:[%s374_s1 + $0x18] sm:$0xff]  ;;  %vm66_vm1 = vcmask 64512   ;;  %s228_s18 = sshll.u32 %s376_s3, 4  ;;  %s291_s19 = smov 128   ;;  %s229_s18 = int_to_ptr.hbm [resolvable:$true] %s228_s18 }
   0x9   :  { %v19_v9 = vld [vmem:[%s374_s1 + $0x10] sm:$0xff]  ;;  %v18_v10 = vld [vmem:[%s374_s1 + $0x8] sm:$0xff]  ;;  %v17_v11 = vld [vmem:[%s374_s1] sm:$0xff]  ;;  %s288_s1 = smov 112   ;;  %s292_s20 = smov 8  }
   0xa   :  { %48 = vmatpush.msra.mxu0 %v24_v4  ;;  %v15_v12 = vld [vmem:[%s373_s0] sm:$0xff]  ;;  %v16_v13 = vld [vmem:[%s373_s0 + $0x8] sm:$0xff]  ;;  %s290_s0 = smov [#allocation2]  }
   0xb   :  { %v253_v14 = vld [vmem:[%s375_s2] ss:$0 sm:$0xff]  ;;  %s226_s2 = sshll.u32 %s290_s0, 4  ;;  %s227_s2 = int_to_ptr.vmem [resolvable:$true] %s226_s2 }
   0xc   :  { %49 = vmatpush.msra.mxu0 %v23_v5 }
   0xe   :  { %50 = vmatpush.msra.mxu0 %v22_v6 }
  0x10   :  { %51 = vmatpush.msra.mxu0 %v21_v7 }
  0x12   :  { %52 = vmatpush.msra.mxu0 %v20_v8 }
  0x14   :  { %53 = vmatpush.msra.mxu0 %v19_v9 }
  0x16   :  { %54 = vmatpush.msra.mxu0 %v18_v10 }
  0x18   :  { %55 = vmatpush.msra.mxu0 %v17_v11 }
  0x19   :  { %240 = vmatmul.msk.f32.vlgmr.msra.gmra.mxu0 %vm33_vm0, %v15_v12 }
  0x21   :  { %241 = vmatmul.msk.f32.gmra.mxu0 %vm33_vm0, %v16_v13 }
  0x96   :  { %v57_v15 = vpop.f32.mrf.mxu0 }
  0x97   :  { %v58_v16 = vadd.f32 %v253_v14, %v57_v15 }
  0x99   :  { %166 = vrot.lane.b32.xlu2 %v58_v16, %s288_s1  ;;  %64 = vrot.lane.b32.xlu0 %v58_v16, %s289_s15 }
  0x9e   :  { %v60_v17 = vpop.f32.mrf.mxu0 }
  0x9f   :  { %v61_v18 = vadd.f32 %v253_v14, %v60_v17 }
  0xa1   :  { %192 = vrot.lane.b32.xlu2 %v61_v18, %s288_s1  ;;  %92 = vrot.lane.b32.xlu0 %v61_v18, %s289_s15 }
  0xf3   :  { %v167_v19 = vpop.permute.xlu2 %166 }
  0xf4   :  { %187 = vmatpush.msra.mxu3 %v167_v19 }
  0xfb   :  { %v193_v20 = vpop.permute.xlu2 %192 }
  0xfc   :  { %213 = vmatpush.msrb.mxu3 %v193_v20 }
 0x10b   :  { %v65_v21 = vpop.permute.xlu0 %64 }
 0x10c   :  { %242 = vmatpush.xpose.msk.msra.mxu1 %vm66_vm1, %v65_v21 }
 0x10f   :  { %243 = vmatmul.msk.f32.vlgmr.msra.gmra.mxu1 %vm66_vm1, %v58_v16 }
 0x113   :  { %v93_v22 = vpop.permute.xlu0 %92 }
 0x114   :  { %244 = vmatpush.xpose.msk.msra.mxu2 %vm66_vm1, %v93_v22 }
 0x117   :  { %245 = vmatmul.msk.f32.vlgmr.msra.gmra.mxu2 %vm66_vm1, %v61_v18 }
 0x18c   :  { %v88_v23 = vpop.f32.mrf.mxu1 }
 0x18d   :  { %v118_v24 = vsel %vm66_vm1, %v88_v23, -inf }
 0x18e   :  { %119 = vmax.xlane.f32.xlu1 %v118_v24 }
 0x19a   :  { %v115_v25 = vpop.f32.mrf.mxu2 }
 0x19b   :  { %v121_v26 = vsel %vm66_vm1, %v115_v25, -inf }
 0x19c   :  { %122 = vmax.xlane.f32.xlu1 %v121_v26 }
 0x201   :  { %v120_v27 = vpop.xlane.xlu1 %119 }
 0x202   :  { %v124_v28 = vsub.f32 %v88_v23, %v120_v27 }
 0x204   :  { %v126_v29 = vmul.f32 1.442695, %v124_v28 }
 0x206   :  { %254 = vpow2.f32 %v126_v29 }
 0x20c   :  { %v255_v30 = vpop.eup %254 }
 0x20d   :  { %246 = vmatmul.msk.f32.vlgmr.msra.gmra.mxu3 %vm66_vm1, %v255_v30  ;;  %v130_v31 = vsel %vm66_vm1, %v255_v30, 0.0 }
 0x20e   :  { %131 = vadd.xlane.f32.xlu0 %v130_v31 }
 0x20f   :  { %v123_v32 = vpop.xlane.xlu1 %122 }
 0x210   :  { %v125_v33 = vsub.f32 %v115_v25, %v123_v32 }
 0x212   :  { %v128_v34 = vmul.f32 1.442695, %v125_v33 }
 0x214   :  { %256 = vpow2.f32 %v128_v34 }
 0x21a   :  { %v257_v35 = vpop.eup %256 }
 0x21b   :  { %247 = vmatmul.msk.f32.vlgmr.msrb.gmra.mxu3 %vm66_vm1, %v257_v35  ;;  %v133_v36 = vsel %vm66_vm1, %v257_v35, 0.0 }
 0x21c   :  { %134 = vadd.xlane.f32.xlu1 %v133_v36 }
 0x281   :  { %v132_v37 = vpop.xlane.xlu0 %131 }
 0x282   :  { %258 = vrcp.f32 %v132_v37  ;;  %v147_v41 = vand.u32 2147483648, %v132_v37  ;;  %v145_v43 = vand.u32 2147483647, %v132_v37  ;;  %vm141_vm3 = vweird.f32 %v132_v37 }
 0x284   :  { %v148_v46 = vor.u32 1.1754944e-38, %v147_v41  ;;  %vm146_vm5 = vcmp.eq.f32.partialorder %v145_v43, 8.507059e+37 }
 0x288   :  { %v259_v38 = vpop.eup %258 }
 0x289   :  { %v137_v39 = vmul.f32 %v259_v38, %v132_v37  ;;  %vm142_vm2 = vweird.f32 %v259_v38 }
 0x28a   :  { %vm143_vm4 = vmor %vm141_vm3, %vm142_vm2 }
 0x28b   :  { %v138_v40 = vsub.f32 1.0, %v137_v39 }
 0x28d   :  { %v139_v42 = vmul.f32 %v259_v38, %v138_v40 }
 0x28f   :  { %v135_v44 = vpop.xlane.xlu1 %134  ;;  %v140_v45 = vadd.f32 %v259_v38, %v139_v42 }
 0x290   :  { %260 = vrcp.f32 %v135_v44  ;;  %v189_v49 = vpop.f32.mrf.mxu3  ;;  %v162_v54 = vand.u32 2147483648, %v135_v44  ;;  %v160_v56 = vand.u32 2147483647, %v135_v44  ;;  %vm156_vm7 = vweird.f32 %v135_v44 }
 0x291   :  { %v144_v47 = vsel %vm143_vm4, %v259_v38, %v140_v45 }
 0x292   :  { %v149_v48 = vsel %vm146_vm5, %v148_v46, %v144_v47  ;;  %v163_v58 = vor.u32 1.1754944e-38, %v162_v54  ;;  %vm161_vm9 = vcmp.eq.f32.partialorder %v160_v56, 8.507059e+37 }
 0x293   :  { %v218_v50 = vmul.f32 %v189_v49, %v149_v48 }
 0x295   :  { %220 = vst.msk [vmem:[#allocation2] sm:$0xff] %vm66_vm1, %v218_v50 }
 0x296   :  { %v261_v51 = vpop.eup %260 }
 0x297   :  { %v152_v52 = vmul.f32 %v261_v51, %v135_v44  ;;  %vm157_vm6 = vweird.f32 %v261_v51 }
 0x298   :  { %vm158_vm8 = vmor %vm156_vm7, %vm157_vm6 }
 0x299   :  { %v153_v53 = vsub.f32 1.0, %v152_v52 }
 0x29b   :  { %v154_v55 = vmul.f32 %v261_v51, %v153_v53 }
 0x29d   :  { %v155_v57 = vadd.f32 %v261_v51, %v154_v55 }
 0x29e   :  { %v215_v61 = vpop.f32.mrf.mxu3 }
 0x29f   :  { %v159_v59 = vsel %vm158_vm8, %v261_v51, %v155_v57 }
 0x2a0   :  { %v164_v60 = vsel %vm161_vm9, %v163_v58, %v159_v59 }
 0x2a1   :  { %v219_v62 = vmul.f32 %v215_v61, %v164_v60 }
 0x2a3   :  { %221 = vst.msk [vmem:[#allocation2 + $0x8] sm:$0xff] %vm66_vm1, %v219_v62 }
 0x2a4   :  { %234 = dma.vmem_to_hbm [thread:$0]  %s227_s2, 256, %s229_s18, [#allocation3], %s291_s19, %s291_s19, %s292_s20  }
 0x2a5   :  { %286 = dma.done.wait [#allocation3], 256  }
 0x2a6   :  { %287 = vsyncadd [#allocation3], 4294967040 }
 0x2a7   :  { %239 = vsyncpa [#allocation3], 1 }

</bundles_post_ra>
